<compile_context>
chip_gen: v7x
topology: tpu7x:2x2x1
jax: 0.10.0
libtpu: 0.0.40
codegen_flags: <defaults>
</compile_context>

<pallas_src>
import jax
import jax.numpy as jnp
import numpy as np
from jax.experimental import pallas as pl
from jax.experimental.pallas import tpu as pltpu

BINS = 10
LOSS_WEIGHT = 1.0

LANES = 128
NCORES = 2              # leading "parallel" grid axis (2 TCs on v7x; no-op elsewhere)
MAX_TILE_ROWS = 512     # 512x128xf32 = 256 KiB per input block
ACC_ROWS = 24           # rows 0..9 counts, 10..19 bce sums, 20 valid count, 21..23 pad

# edges exactly as torch: arange(bins+1).float() / bins ; edges[-1] += 1e-6
_EDGES_NP = np.arange(BINS + 1, dtype=np.float32) / np.float32(BINS)
_EDGES_NP[-1] += np.float32(1e-6)


def _cdiv(a, b):
    return -(-a // b)


def _round_up(x, m):
    return ((x + m - 1) // m) * m


def _ghmc_acc_kernel(pred_ref, tgt_ref, lw_ref, acc_ref):
    """Single fused pass: per-bin per-lane counts + BCE sums + valid count.

    acc_ref is a resident (ACC_ROWS, 128) f32 accumulator (one block per core):
      rows [0, BINS)        : per-lane element count of gradient bin i
      rows [BINS, 2*BINS)   : per-lane sum of BCE-with-logits of elements in bin i
      row  2*BINS           : per-lane count of valid elements
    Per-lane f32 counting is exact up to 2^24 per lane per bin (~2.1e9 elements
    per bin overall), far beyond realistic workloads.
    """
    @pl.when(pl.program_id(1) == 0)
    def _init():
        acc_ref[...] = jnp.zeros_like(acc_ref)

    p = pred_ref[...]
    t = tgt_ref[...]
    lw = lw_ref[...]
    valid = lw > 0.0

    # Shared transcendentals: e = exp(-|p|) feeds both sigmoid and the BCE log term.
    e = jnp.exp(-jnp.abs(p))
    inv = 1.0 / (1.0 + e)
    sig = jnp.where(p >= 0.0, inv, e * inv)                  # sigmoid(p)
    g = jnp.abs(sig - t)                                      # gradient norm, in [0, 1]
    # stable BCE-with-logits: max(x,0) - x*z + log(1 + exp(-|x|))
    bce = jnp.maximum(p, 0.0) - p * t + jnp.log(1.0 + e)

    # Direct bin index (uniform edges): b = clamp(floor(g * BINS), 0, BINS-1).
    b = jnp.floor(g * jnp.float32(BINS)).astype(jnp.int32)
    b = jnp.minimum(b, BINS - 1)
    b = jnp.where(valid, b, jnp.int32(BINS))                  # invalid -> out-of-range bin

    cnt_rows = []
    bce_rows = []
    for i in range(BINS):                                     # static unroll over bins
        m = (b == i).astype(jnp.float32)
        cnt_rows.append(jnp.sum(m, axis=0, keepdims=True))
        bce_rows.append(jnp.sum(bce * m, axis=0, keepdims=True))
    v_row = jnp.sum(valid.astype(jnp.float32), axis=0, keepdims=True)
    pad_rows = jnp.zeros((ACC_ROWS - 2 * BINS - 1, LANES), jnp.float32)

    upd = jnp.concatenate(cnt_rows + bce_rows + [v_row, pad_rows], axis=0)
    acc_ref[...] += upd


def ghmc_loss(pred, target, label_weight, *, loss_weight=LOSS_WEIGHT):
    """GHM-C loss forward, matching GHMC.forward (momentum=0, use_sigmoid=True)."""
    assert pred.shape == target.shape == label_weight.shape
    E = int(np.prod(pred.shape))

    predf = pred.astype(jnp.float32).reshape(-1)
    tgtf = target.astype(jnp.float32).reshape(-1)
    lwf = label_weight.astype(jnp.float32).reshape(-1)

    # Lane-dense repack: flatten to [rows, 128]; pad tail with label_weight = 0.
    rows = _cdiv(E, LANES)
    tile_rows = max(8, min(MAX_TILE_ROWS, _round_up(_cdiv(rows, NCORES), 8)))
    tiles_per_core = _cdiv(rows, NCORES * tile_rows)
    total_rows = NCORES * tiles_per_core * tile_rows
    pad = total_rows * LANES - E
    if pad:
        predf = jnp.pad(predf, (0, pad))
        tgtf = jnp.pad(tgtf, (0, pad))
        lwf = jnp.pad(lwf, (0, pad))       # zero weight -> padding is ignored
    predf = predf.reshape(total_rows, LANES)
    tgtf = tgtf.reshape(total_rows, LANES)
    lwf = lwf.reshape(total_rows, LANES)

    in_spec = pl.BlockSpec((tile_rows, LANES),
                           lambda c, i: (c * tiles_per_core + i, 0))
    out_spec = pl.BlockSpec((ACC_ROWS, LANES), lambda c, i: (c, 0))

    acc = pl.pallas_call(
        _ghmc_acc_kernel,
        out_shape=jax.ShapeDtypeStruct((NCORES * ACC_ROWS, LANES), jnp.float32),
        grid=(NCORES, tiles_per_core),
        in_specs=[in_spec, in_spec, in_spec],
        out_specs=out_spec,
        compiler_params=pltpu.CompilerParams(
            dimension_semantics=("parallel", "arbitrary")),
    )(predf, tgtf, lwf)

    # Tiny epilogue: combine the per-core accumulators, reduce lanes, then apply
    # the GHM weighting per bin (weight is constant within a bin).
    acc = acc.reshape(NCORES, ACC_ROWS, LANES).sum(axis=0)   # (ACC_ROWS, 128)
    lane_sum = acc.sum(axis=1)                               # (ACC_ROWS,)
    counts = lane_sum[:BINS]
    bce_bins = lane_sum[BINS:2 * BINS]
    valid_total = lane_sum[2 * BINS]

    tot = jnp.maximum(valid_total, 1.0)
    nonzero = counts > 0
    n = jnp.sum(nonzero.astype(jnp.float32))
    coef = jnp.where(nonzero, tot / jnp.maximum(counts, 1.0), 0.0)
    coef = coef / jnp.maximum(n, 1.0)                        # (tot / num_in_bin) / n
    loss = jnp.sum(coef * bce_bins) / tot
    return loss * loss_weight


def _sigmoid(x):
    return 1.0 / (1.0 + jnp.exp(-x))


def ghmc_reference(pred, target, label_weight, bins=BINS, loss_weight=LOSS_WEIGHT):
    """Pure-JAX reference mirroring the PyTorch forward (momentum=0)."""
    edges = jnp.asarray(_EDGES_NP)
    g = jnp.abs(_sigmoid(pred) - target)
    valid = label_weight > 0
    tot = jnp.maximum(jnp.sum(valid.astype(jnp.float32)), 1.0)
    weights = jnp.zeros_like(pred)
    n = jnp.float32(0.0)
    for i in range(bins):
        inds = (g >= edges[i]) & (g < edges[i + 1]) & valid
        num_in_bin = jnp.sum(inds.astype(jnp.float32))
        weights = jnp.where(inds & (num_in_bin > 0),
                            tot / jnp.maximum(num_in_bin, 1.0), weights)
        n = n + (num_in_bin > 0).astype(jnp.float32)
    weights = jnp.where(n > 0, weights / jnp.maximum(n, 1.0), weights)
    bce = jnp.maximum(pred, 0.0) - pred * target + jnp.log(1.0 + jnp.exp(-jnp.abs(pred)))
    return jnp.sum(bce * weights) / tot * loss_weight


if __name__ == "__main__":
    key = jax.random.PRNGKey(0)
    k1, k2, k3 = jax.random.split(key, 3)

    N, C = 64, 16  # batch_num x class_num
    pred = 2.0 * jax.random.normal(k1, (N, C), dtype=jnp.float32)
    target = (jax.random.uniform(k2, (N, C)) > 0.5).astype(jnp.float32)
    label_weight = (jax.random.uniform(k3, (N, C)) > 0.2).astype(jnp.float32)

    loss = ghmc_loss(pred, target, label_weight)
    loss = jax.block_until_ready(loss)

    ref = jax.block_until_ready(ghmc_reference(pred, target, label_weight))
    assert np.isfinite(float(loss)), "non-finite loss"
    np.testing.assert_allclose(float(loss), float(ref), rtol=1e-3, atol=1e-5)

    print("KERNEL_OK")
</pallas_src>

<mosaic_0001>
module attributes {stable_mosaic.version = 11 : i64} {
  func.func @_ghmc_acc_kernel(%arg0: i32, %arg1: i32, %arg2: memref<8x128xf32, #tpu.memory_space<vmem>>, %arg3: memref<8x128xf32, #tpu.memory_space<vmem>>, %arg4: memref<8x128xf32, #tpu.memory_space<vmem>>, %arg5: memref<24x128xf32, #tpu.memory_space<vmem>>) attributes {dimension_semantics = [#tpu.dimension_semantics<parallel>, #tpu.dimension_semantics<arbitrary>], iteration_bounds = array<i64: 2, 1>, scalar_prefetch = 0 : i64, scratch_operands = 0 : i64, tpu.core_type = #tpu.core_type<tc>, window_params = [{transform_indices = @transform_0, window_bounds = array<i64: 8, 128>}, {transform_indices = @transform_1, window_bounds = array<i64: 8, 128>}, {transform_indices = @transform_2, window_bounds = array<i64: 8, 128>}, {transform_indices = @transform_3, window_bounds = array<i64: 24, 128>}]} {
    %c0_i32 = arith.constant 0 : i32
    %0 = arith.cmpi eq, %arg1, %c0_i32 : i32
    %1 = arith.extui %0 : i1 to i32
    %c0_i32_0 = arith.constant 0 : i32
    %2 = arith.cmpi ne, %1, %c0_i32_0 : i32
    scf.if %2 {
      %cst_41 = arith.constant 0.000000e+00 : f32
      %139 = vector.broadcast %cst_41 : f32 to vector<24x128xf32>
      %c0_42 = arith.constant 0 : index
      %c0_43 = arith.constant 0 : index
      %140 = vector.load %arg5[%c0_42, %c0_43] : memref<24x128xf32, #tpu.memory_space<vmem>>, vector<24x128xf32>
      tpu.vector_store %arg5[%c0_42, %c0_43], %139 {strides = array<i32>} : memref<24x128xf32, #tpu.memory_space<vmem>>, vector<24x128xf32>,
    } else {
    }
    %c0 = arith.constant 0 : index
    %c0_1 = arith.constant 0 : index
    %3 = vector.load %arg2[%c0, %c0_1] : memref<8x128xf32, #tpu.memory_space<vmem>>, vector<8x128xf32>
    %c0_2 = arith.constant 0 : index
    %c0_3 = arith.constant 0 : index
    %4 = vector.load %arg3[%c0_2, %c0_3] : memref<8x128xf32, #tpu.memory_space<vmem>>, vector<8x128xf32>
    %c0_4 = arith.constant 0 : index
    %c0_5 = arith.constant 0 : index
    %5 = vector.load %arg4[%c0_4, %c0_5] : memref<8x128xf32, #tpu.memory_space<vmem>>, vector<8x128xf32>
    %cst = arith.constant 0.000000e+00 : f32
    %6 = vector.broadcast %cst : f32 to vector<8x128xf32>
    %7 = arith.cmpf ogt, %5, %6 : vector<8x128xf32>
    %8 = math.absf %3 : vector<8x128xf32>
    %cst_6 = arith.constant 0.000000e+00 : f32
    %9 = vector.broadcast %cst_6 : f32 to vector<8x128xf32>
    %10 = arith.subf %9, %8 : vector<8x128xf32>
    %11 = math.exp %10 : vector<8x128xf32>
    %cst_7 = arith.constant 1.000000e+00 : f32
    %12 = vector.broadcast %cst_7 : f32 to vector<8x128xf32>
    %13 = arith.addf %12, %11 : vector<8x128xf32>
    %cst_8 = arith.constant 1.000000e+00 : f32
    %14 = vector.broadcast %cst_8 : f32 to vector<8x128xf32>
    %15 = arith.divf %14, %13 : vector<8x128xf32>
    %cst_9 = arith.constant 0.000000e+00 : f32
    %16 = vector.broadcast %cst_9 : f32 to vector<8x128xf32>
    %17 = arith.cmpf oge, %3, %16 : vector<8x128xf32>
    %18 = arith.mulf %11, %15 : vector<8x128xf32>
    %19 = arith.select %17, %15, %18 : vector<8x128xi1>, vector<8x128xf32>
    %20 = arith.subf %19, %4 : vector<8x128xf32>
    %21 = math.absf %20 : vector<8x128xf32>
    %cst_10 = arith.constant 0.000000e+00 : f32
    %22 = vector.broadcast %cst_10 : f32 to vector<8x128xf32>
    %23 = arith.maximumf %3, %22 : vector<8x128xf32>
    %24 = arith.mulf %3, %4 : vector<8x128xf32>
    %25 = arith.subf %23, %24 : vector<8x128xf32>
    %cst_11 = arith.constant 1.000000e+00 : f32
    %26 = vector.broadcast %cst_11 : f32 to vector<8x128xf32>
    %27 = arith.addf %26, %11 : vector<8x128xf32>
    %28 = math.log %27 : vector<8x128xf32>
    %29 = arith.addf %25, %28 : vector<8x128xf32>
    %cst_12 = arith.constant 1.000000e+01 : f32
    %30 = vector.broadcast %cst_12 : f32 to vector<8x128xf32>
    %31 = arith.mulf %21, %30 : vector<8x128xf32>
    %32 = math.floor %31 : vector<8x128xf32>
    %33 = arith.fptosi %32 : vector<8x128xf32> to vector<8x128xi32>
    %c9_i32 = arith.constant 9 : i32
    %34 = vector.broadcast %c9_i32 : i32 to vector<8x128xi32>
    %35 = arith.minsi %33, %34 : vector<8x128xi32>
    %c10_i32 = arith.constant 10 : i32
    %36 = vector.broadcast %c10_i32 : i32 to vector<8x128xi32>
    %37 = arith.select %7, %35, %36 : vector<8x128xi1>, vector<8x128xi32>
    %c0_i32_13 = arith.constant 0 : i32
    %38 = vector.broadcast %c0_i32_13 : i32 to vector<8x128xi32>
    %39 = arith.cmpi eq, %37, %38 : vector<8x128xi32>
    %40 = arith.extui %39 : vector<8x128xi1> to vector<8x128xi32>
    %41 = arith.sitofp %40 : vector<8x128xi32> to vector<8x128xf32>
    %cst_14 = arith.constant dense<0.000000e+00> : vector<128xf32>
    %42 = vector.multi_reduction <add>, %41, %cst_14 [0] : vector<8x128xf32> to vector<128xf32>
    %43 = vector.shape_cast %42 : vector<128xf32> to vector<1x128xf32>
    %44 = arith.mulf %29, %41 : vector<8x128xf32>
    %cst_15 = arith.constant dense<0.000000e+00> : vector<128xf32>
    %45 = vector.multi_reduction <add>, %44, %cst_15 [0] : vector<8x128xf32> to vector<128xf32>
    %46 = vector.shape_cast %45 : vector<128xf32> to vector<1x128xf32>
    %c1_i32 = arith.constant 1 : i32
    %47 = vector.broadcast %c1_i32 : i32 to vector<8x128xi32>
    %48 = arith.cmpi eq, %37, %47 : vector<8x128xi32>
    %49 = arith.extui %48 : vector<8x128xi1> to vector<8x128xi32>
    %50 = arith.sitofp %49 : vector<8x128xi32> to vector<8x128xf32>
    %cst_16 = arith.constant dense<0.000000e+00> : vector<128xf32>
    %51 = vector.multi_reduction <add>, %50, %cst_16 [0] : vector<8x128xf32> to vector<128xf32>
    %52 = vector.shape_cast %51 : vector<128xf32> to vector<1x128xf32>
    %53 = arith.mulf %29, %50 : vector<8x128xf32>
    %cst_17 = arith.constant dense<0.000000e+00> : vector<128xf32>
    %54 = vector.multi_reduction <add>, %53, %cst_17 [0] : vector<8x128xf32> to vector<128xf32>
    %55 = vector.shape_cast %54 : vector<128xf32> to vector<1x128xf32>
    %c2_i32 = arith.constant 2 : i32
    %56 = vector.broadcast %c2_i32 : i32 to vector<8x128xi32>
    %57 = arith.cmpi eq, %37, %56 : vector<8x128xi32>
    %58 = arith.extui %57 : vector<8x128xi1> to vector<8x128xi32>
    %59 = arith.sitofp %58 : vector<8x128xi32> to vector<8x128xf32>
    %cst_18 = arith.constant dense<0.000000e+00> : vector<128xf32>
    %60 = vector.multi_reduction <add>, %59, %cst_18 [0] : vector<8x128xf32> to vector<128xf32>
    %61 = vector.shape_cast %60 : vector<128xf32> to vector<1x128xf32>
    %62 = arith.mulf %29, %59 : vector<8x128xf32>
    %cst_19 = arith.constant dense<0.000000e+00> : vector<128xf32>
    %63 = vector.multi_reduction <add>, %62, %cst_19 [0] : vector<8x128xf32> to vector<128xf32>
    %64 = vector.shape_cast %63 : vector<128xf32> to vector<1x128xf32>
    %c3_i32 = arith.constant 3 : i32
    %65 = vector.broadcast %c3_i32 : i32 to vector<8x128xi32>
    %66 = arith.cmpi eq, %37, %65 : vector<8x128xi32>
    %67 = arith.extui %66 : vector<8x128xi1> to vector<8x128xi32>
    %68 = arith.sitofp %67 : vector<8x128xi32> to vector<8x128xf32>
    %cst_20 = arith.constant dense<0.000000e+00> : vector<128xf32>
    %69 = vector.multi_reduction <add>, %68, %cst_20 [0] : vector<8x128xf32> to vector<128xf32>
    %70 = vector.shape_cast %69 : vector<128xf32> to vector<1x128xf32>
    %71 = arith.mulf %29, %68 : vector<8x128xf32>
    %cst_21 = arith.constant dense<0.000000e+00> : vector<128xf32>
    %72 = vector.multi_reduction <add>, %71, %cst_21 [0] : vector<8x128xf32> to vector<128xf32>
    %73 = vector.shape_cast %72 : vector<128xf32> to vector<1x128xf32>
    %c4_i32 = arith.constant 4 : i32
    %74 = vector.broadcast %c4_i32 : i32 to vector<8x128xi32>
    %75 = arith.cmpi eq, %37, %74 : vector<8x128xi32>
    %76 = arith.extui %75 : vector<8x128xi1> to vector<8x128xi32>
    %77 = arith.sitofp %76 : vector<8x128xi32> to vector<8x128xf32>
    %cst_22 = arith.constant dense<0.000000e+00> : vector<128xf32>
    %78 = vector.multi_reduction <add>, %77, %cst_22 [0] : vector<8x128xf32> to vector<128xf32>
    %79 = vector.shape_cast %78 : vector<128xf32> to vector<1x128xf32>
    %80 = arith.mulf %29, %77 : vector<8x128xf32>
    %cst_23 = arith.constant dense<0.000000e+00> : vector<128xf32>
    %81 = vector.multi_reduction <add>, %80, %cst_23 [0] : vector<8x128xf32> to vector<128xf32>
    %82 = vector.shape_cast %81 : vector<128xf32> to vector<1x128xf32>
    %c5_i32 = arith.constant 5 : i32
    %83 = vector.broadcast %c5_i32 : i32 to vector<8x128xi32>
    %84 = arith.cmpi eq, %37, %83 : vector<8x128xi32>
    %85 = arith.extui %84 : vector<8x128xi1> to vector<8x128xi32>
    %86 = arith.sitofp %85 : vector<8x128xi32> to vector<8x128xf32>
    %cst_24 = arith.constant dense<0.000000e+00> : vector<128xf32>
    %87 = vector.multi_reduction <add>, %86, %cst_24 [0] : vector<8x128xf32> to vector<128xf32>
    %88 = vector.shape_cast %87 : vector<128xf32> to vector<1x128xf32>
    %89 = arith.mulf %29, %86 : vector<8x128xf32>
    %cst_25 = arith.constant dense<0.000000e+00> : vector<128xf32>
    %90 = vector.multi_reduction <add>, %89, %cst_25 [0] : vector<8x128xf32> to vector<128xf32>
    %91 = vector.shape_cast %90 : vector<128xf32> to vector<1x128xf32>
    %c6_i32 = arith.constant 6 : i32
    %92 = vector.broadcast %c6_i32 : i32 to vector<8x128xi32>
    %93 = arith.cmpi eq, %37, %92 : vector<8x128xi32>
    %94 = arith.extui %93 : vector<8x128xi1> to vector<8x128xi32>
    %95 = arith.sitofp %94 : vector<8x128xi32> to vector<8x128xf32>
    %cst_26 = arith.constant dense<0.000000e+00> : vector<128xf32>
    %96 = vector.multi_reduction <add>, %95, %cst_26 [0] : vector<8x128xf32> to vector<128xf32>
    %97 = vector.shape_cast %96 : vector<128xf32> to vector<1x128xf32>
    %98 = arith.mulf %29, %95 : vector<8x128xf32>
    %cst_27 = arith.constant dense<0.000000e+00> : vector<128xf32>
    %99 = vector.multi_reduction <add>, %98, %cst_27 [0] : vector<8x128xf32> to vector<128xf32>
    %100 = vector.shape_cast %99 : vector<128xf32> to vector<1x128xf32>
    %c7_i32 = arith.constant 7 : i32
    %101 = vector.broadcast %c7_i32 : i32 to vector<8x128xi32>
    %102 = arith.cmpi eq, %37, %101 : vector<8x128xi32>
    %103 = arith.extui %102 : vector<8x128xi1> to vector<8x128xi32>
    %104 = arith.sitofp %103 : vector<8x128xi32> to vector<8x128xf32>
    %cst_28 = arith.constant dense<0.000000e+00> : vector<128xf32>
    %105 = vector.multi_reduction <add>, %104, %cst_28 [0] : vector<8x128xf32> to vector<128xf32>
    %106 = vector.shape_cast %105 : vector<128xf32> to vector<1x128xf32>
    %107 = arith.mulf %29, %104 : vector<8x128xf32>
    %cst_29 = arith.constant dense<0.000000e+00> : vector<128xf32>
    %108 = vector.multi_reduction <add>, %107, %cst_29 [0] : vector<8x128xf32> to vector<128xf32>
    %109 = vector.shape_cast %108 : vector<128xf32> to vector<1x128xf32>
    %c8_i32 = arith.constant 8 : i32
    %110 = vector.broadcast %c8_i32 : i32 to vector<8x128xi32>
    %111 = arith.cmpi eq, %37, %110 : vector<8x128xi32>
    %112 = arith.extui %111 : vector<8x128xi1> to vector<8x128xi32>
    %113 = arith.sitofp %112 : vector<8x128xi32> to vector<8x128xf32>
    %cst_30 = arith.constant dense<0.000000e+00> : vector<128xf32>
    %114 = vector.multi_reduction <add>, %113, %cst_30 [0] : vector<8x128xf32> to vector<128xf32>
    %115 = vector.shape_cast %114 : vector<128xf32> to vector<1x128xf32>
    %116 = arith.mulf %29, %113 : vector<8x128xf32>
    %cst_31 = arith.constant dense<0.000000e+00> : vector<128xf32>
    %117 = vector.multi_reduction <add>, %116, %cst_31 [0] : vector<8x128xf32> to vector<128xf32>
    %118 = vector.shape_cast %117 : vector<128xf32> to vector<1x128xf32>
    %c9_i32_32 = arith.constant 9 : i32
    %119 = vector.broadcast %c9_i32_32 : i32 to vector<8x128xi32>
    %120 = arith.cmpi eq, %37, %119 : vector<8x128xi32>
    %121 = arith.extui %120 : vector<8x128xi1> to vector<8x128xi32>
    %122 = arith.sitofp %121 : vector<8x128xi32> to vector<8x128xf32>
    %cst_33 = arith.constant dense<0.000000e+00> : vector<128xf32>
    %123 = vector.multi_reduction <add>, %122, %cst_33 [0] : vector<8x128xf32> to vector<128xf32>
    %124 = vector.shape_cast %123 : vector<128xf32> to vector<1x128xf32>
    %125 = arith.mulf %29, %122 : vector<8x128xf32>
    %cst_34 = arith.constant dense<0.000000e+00> : vector<128xf32>
    %126 = vector.multi_reduction <add>, %125, %cst_34 [0] : vector<8x128xf32> to vector<128xf32>
    %127 = vector.shape_cast %126 : vector<128xf32> to vector<1x128xf32>
    %128 = arith.extui %7 : vector<8x128xi1> to vector<8x128xi32>
    %129 = arith.sitofp %128 : vector<8x128xi32> to vector<8x128xf32>
    %cst_35 = arith.constant dense<0.000000e+00> : vector<128xf32>
    %130 = vector.multi_reduction <add>, %129, %cst_35 [0] : vector<8x128xf32> to vector<128xf32>
    %131 = vector.shape_cast %130 : vector<128xf32> to vector<1x128xf32>
    %cst_36 = arith.constant 0.000000e+00 : f32
    %132 = vector.broadcast %cst_36 : f32 to vector<3x128xf32>
    %133 = tpu.concatenate %43, %52, %61, %70, %79, %88, %97, %106, %115, %124, %46, %55, %64, %73, %82, %91 in 0 : vector<1x128xf32>, vector<1x128xf32>, vector<1x128xf32>, vector<1x128xf32>, vector<1x128xf32>, vector<1x128xf32>, vector<1x128xf32>, vector<1x128xf32>, vector<1x128xf32>, vector<1x128xf32>, vector<1x128xf32>, vector<1x128xf32>, vector<1x128xf32>, vector<1x128xf32>, vector<1x128xf32>, vector<1x128xf32> -> vector<16x128xf32>
    %134 = tpu.concatenate %100, %109, %118, %127, %131, %132 in 0 : vector<1x128xf32>, vector<1x128xf32>, vector<1x128xf32>, vector<1x128xf32>, vector<1x128xf32>, vector<3x128xf32> -> vector<8x128xf32>
    %135 = tpu.concatenate %133, %134 in 0 : vector<16x128xf32>, vector<8x128xf32> -> vector<24x128xf32>
    %c0_37 = arith.constant 0 : index
    %c0_38 = arith.constant 0 : index
    %136 = vector.load %arg5[%c0_37, %c0_38] : memref<24x128xf32, #tpu.memory_space<vmem>>, vector<24x128xf32>
    %137 = arith.addf %136, %135 : vector<24x128xf32>
    %c0_39 = arith.constant 0 : index
    %c0_40 = arith.constant 0 : index
    %138 = vector.load %arg5[%c0_39, %c0_40] : memref<24x128xf32, #tpu.memory_space<vmem>>, vector<24x128xf32>
    tpu.vector_store %arg5[%c0_39, %c0_40], %137 {strides = array<i32>} : memref<24x128xf32, #tpu.memory_space<vmem>>, vector<24x128xf32>,
    return
  }
  func.func @transform_0(%arg0: i32, %arg1: i32) -> (i32, i32) {
    %c1_i32 = arith.constant 1 : i32
    %0 = arith.muli %arg0, %c1_i32 : i32
    %1 = arith.addi %0, %arg1 : i32
    %c0_i32 = arith.constant 0 : i32
    %c0_i32_0 = arith.constant 0 : i32
    return %1, %c0_i32 : i32, i32
  }
  func.func @transform_1(%arg0: i32, %arg1: i32) -> (i32, i32) {
    %c1_i32 = arith.constant 1 : i32
    %0 = arith.muli %arg0, %c1_i32 : i32
    %1 = arith.addi %0, %arg1 : i32
    %c0_i32 = arith.constant 0 : i32
    %c0_i32_0 = arith.constant 0 : i32
    return %1, %c0_i32 : i32, i32
  }
  func.func @transform_2(%arg0: i32, %arg1: i32) -> (i32, i32) {
    %c1_i32 = arith.constant 1 : i32
    %0 = arith.muli %arg0, %c1_i32 : i32
    %1 = arith.addi %0, %arg1 : i32
    %c0_i32 = arith.constant 0 : i32
    %c0_i32_0 = arith.constant 0 : i32
    return %1, %c0_i32 : i32, i32
  }
  func.func @transform_3(%arg0: i32, %arg1: i32) -> (i32, i32) {
    %c0_i32 = arith.constant 0 : i32
    %c0_i32_0 = arith.constant 0 : i32
    return %arg0, %c0_i32 : i32, i32
  }
}

</mosaic_0001>

<bundles_post_ra>
// kernel: tpu_custom_call.1
= control target key start
LH: loop header
LB: loop body
LE: loop exit
PB: predicated region body
PF: predicated region fallthrough
CT: control target
= control target key end

     0   :  { %s1334_s0 = inlined_call_operand.hbm [shape: f32[16,128], index: 0, kind: input, shape index: {}]   ;;  %s1335_s1 = inlined_call_operand.hbm [shape: f32[16,128], index: 1, kind: input, shape index: {}]   ;;  %s1336_s2 = inlined_call_operand.hbm [shape: f32[16,128], index: 2, kind: input, shape index: {}]   ;;  %s1337_s3 = inlined_call_operand.hbm [shape: f32[48,128], index: 3, kind: output, shape index: {}]  }
   0x1   :  { %1343 = sst [smem:[#allocation15_spill]] %s1335_s1 }
   0x2   :  { %8 = vsyncpa [#allocation3], 0 }
   0x3   :  { %10 = vsyncpa [#allocation3 + $0x1], 0 }
   0x4   :  { %11 = vsyncpa [#allocation6], 0 }
   0x5   :  { %13 = vsyncpa [#allocation6 + $0x1], 0 }
   0x6   :  { %14 = vsyncpa [#allocation4], 0 }
   0x7   :  { %16 = vsyncpa [#allocation4 + $0x1], 0  ;;  %s979_s12 = smov 0   ;;  %s981_s13 = smov 0  }
   0x8   :  { %s983_s14 = smov 0   ;;  %s985_s15 = smov 0  }
   0x9   :  { %s987_s16 = smov 0   ;;  %s989_s17 = smov 0  }
   0xa LB: > { %1344 = sst [smem:[#allocation12_spill]] %s946_s16  ;;  %s1010_s18 = sadd.s32 4294967295, %s950_s17   ;;  %s950_s17 = sphi %s989_s17, %s22_s17   ;;  %s946_s16 = sphi %s987_s16, %s1365_s16   ;;  %s942_s15 = sphi %s985_s15, %s1364_s15   ;;  %s938_s14 = sphi %s983_s14, %s1368_s14   ;;  %s934_s13 = sphi %s981_s13, %s1367_s13   ;;  %s930_s12 = sphi %s979_s12, %s1366_s12  }
   0xb   : > { %s662_s19 = sadd.s32 4294967294, %s950_s17   ;;  %s34_s20 = sadd.s32 1, %s946_s16 }
   0xc   : > { %s43_s21 = sadd.s32 1, %s938_s14  ;;  %p36_p0 = scmp.ge.s32.totalorder %s34_s20, 2 }
   0xd   : > { %p50_p1 = scmp.ne.s32.totalorder %s938_s14, %s934_s13  ;;  %p51_p2 = scmp.eq.s32.totalorder %s950_s17, 0 }
   0xe   : > { %p56_p3 = scmp.ne.s32.totalorder %s934_s13, %s930_s12  ;;  %s1370_s20 = smov (%p36_p0, %s34_s20), 0 }
   0xf   : > { %1345 = sst [smem:[#allocation13_spill]] %s1370_s20  ;;  %p1022_p4 = por %p51_p2, %p50_p1 }
  0x10   : > { %p57_p5 = scmp.eq.s32.totalorder %s1010_s18, 0  ;;  %s40_s23 = ssub.s32 %s946_s16, %s1370_s20 }
  0x11   : > { %p136_p6 = scmp.eq.s32.totalorder %s1010_s18, 1  ;;  %p41_p7 = scmp.eq.s32.totalorder %s40_s23, 0 }
  0x12   : > { %p1030_p8 = por %p57_p5, %p56_p3  ;;  %p142_p10 = scmp.eq.s32.totalorder %s662_s19, 1 }
  0x13   : > { %p1034_p9 = por %p136_p6, %p50_p1  ;;  %p715_p13 = scmp.lt.s32.totalorder %s950_s17, 2 }
  0x14   : > { %s1347_s24 = scalar_select %p1030_p8, 1, 0 }
  0x15   : > { %s1348_s25 = scalar_select %p1034_p9, 1, 0 }
  0x16   : > { %s1039_s26 = scalar_select %p41_p7, %s938_s14, %s43_s21  }
  0x17   : > { %p1041_p11 = por %p142_p10, %p56_p3  ;;  %s162_s28 = sand.u32 1, %s938_s14  }
  0x18   : > { %1349 = sst [smem:[#allocation14_spill]] %s1039_s26  ;;  %s1050_s29 = sshll.u32 %s162_s28, 3 }
  0x19   : > { %s1350_s27 = scalar_select %p1041_p11, 1, 0 }
  0x1a   : > { %s1053_s30 = sshll.u32 %s946_s16, 7  ;;  %p1057_p0 = pnand %p715_p13, %p1022_p4 }
  0x1b   : > { %s181_s5 = sand.u32 1, %s950_s17   ;;  %s1352_s1 = sld [smem:[#allocation15_spill]] }
  0x1c   : > { %s1351_s4 = scalar_select %p1057_p0, 1, 0 }
  0x1d   : > { %s185_s9 = scalar_lea.vmem [#allocation5], %s1050_s29  ;;  %s1073_s11 = scalar_lea.sflag [#allocation6], %s181_s5 }
  0x1e   : > { %s193_s10 = sshll.u32 %s185_s9, 4  ;;  %p1079_p4 = pneg %p1057_p0  ;;  %s1070_s10 = int_to_ptr.vmem [resolvable:$true] %s193_s10 }
  0x21   : > { %s1066_s8 = scalar_lea.hbm %s1352_s1, %s1053_s30  ;;  %s779_s6 = scalar_lea.hbm %s1352_s1, 256 }
  0x22   : > { %s774_s19 = scalar_lea.hbm %s1066_s8, 128  ;;  %p780_p7 = scmp.lt.u32.totalorder %s1066_s8, %s1352_s1 }
  0x23   : > { %p775_p3 = scmp.ne.s32.totalorder %s1066_s8, %s774_s19  ;;  %p781_p10 = scmp.lt.u32.totalorder %s779_s6, %s774_s19 }
  0x24   : > { %p783_p12 = scmp.lt.u32.totalorder %s774_s19, %s1066_s8 }
  0x25   : > { %p777_p5 = pnand %p1079_p4, %p775_p3  ;;  %p782_p13 = por %p781_p10, %p780_p7 }
  0x27   : > { %p778_p6 = pneg %p777_p5  ;;  %p784_p1 = por %p783_p12, %p782_p13 }
  0x29   : > { %p785_p2 = pnand %p784_p1, %p778_p6 }
  0x2b   : > { %788 = shalt.err (!%p785_p2)
}
  0x2c   : > { %s789_s5 = scalar_lea.vmem %s1070_s10, 128  ;;  %s952_s22 = smov [#allocation5]  }
  0x2d   : > { %p790_p3 = scmp.ne.s32.totalorder %s1070_s10, %s789_s5  ;;  %s794_s23 = sshll.u32 %s952_s22, 4  ;;  %s795_s23 = int_to_ptr.vmem [resolvable:$false] %s794_s23 }
  0x2e   : > { %s796_s7 = scalar_lea.vmem %s795_s23, 256  ;;  %p797_p9 = scmp.lt.s32.totalorder %s1070_s10, %s795_s23 }
  0x2f   : > { %p792_p5 = pnand %p790_p3, %p1079_p4  ;;  %p798_p8 = scmp.lt.s32.totalorder %s796_s7, %s789_s5 }
  0x31   : > { %p793_p11 = pneg %p792_p5  ;;  %p799_p7 = por %p798_p8, %p797_p9 }
  0x33   : > { %p800_p10 = pnand %p799_p7, %p793_p11 }
  0x35   : > { %803 = shalt.err (!%p800_p10)
}
  0x36   : > { %707 = dma.hbm_to_vmem [thread:$0]  (!%p1057_p0), %s1066_s8, 128, %s1070_s10, %s1073_s11  }
  0x37   : > { %p1354_p12 = scmp.lt.s32.totalorder %s950_s17, 3  ;;  %p1355_p1 = scmp.ge.s32.totalorder %s950_s17, 1 }
  0x38   : > { %s1115_s5 = scalar_lea.hbm %s1334_s0, %s1053_s30  ;;  %s166_s22 = scalar_lea.vmem [#allocation2], %s1050_s29 }
  0x39   : > { %p1107_p2 = pnand %p1355_p1, %p1354_p12  ;;  %s174_s23 = sshll.u32 %s166_s22, 4  ;;  %s1118_s23 = int_to_ptr.vmem [resolvable:$true] %s174_s23 }
  0x3a   : > { %s1124_s7 = scalar_lea.hbm %s1336_s2, %s1053_s30  ;;  %s163_s1 = scalar_lea.sflag [#allocation3], %s162_s28 }
  0x3b   : > { %s1356_s19 = scalar_select %p1107_p2, 1, 0 }
  0x3c   : > { %s804_s20 = scalar_lea.hbm %s1115_s5, 128  ;;  %s809_s16 = scalar_lea.hbm %s1334_s0, 256 }
  0x3d   : > { %p805_p8 = scmp.ne.s32.totalorder %s1115_s5, %s804_s20  ;;  %p810_p6 = scmp.lt.u32.totalorder %s1115_s5, %s1334_s0 }
  0x3e   : > { %p811_p13 = scmp.lt.u32.totalorder %s809_s16, %s804_s20  ;;  %p813_p5 = scmp.lt.u32.totalorder %s804_s20, %s1115_s5 }
  0x3f   : > { %p807_p9 = pnand %p805_p8, %p1079_p4 }
  0x40   : > { %p812_p3 = por %p811_p13, %p810_p6 }
  0x41   : > { %p808_p11 = pneg %p807_p9 }
  0x42   : > { %p814_p7 = por %p813_p5, %p812_p3 }
  0x44   : > { %p815_p10 = pnand %p814_p7, %p808_p11 }
  0x46   : > { %818 = shalt.err (!%p815_p10)
}
  0x47   : > { %s819_s28 = scalar_lea.vmem %s1118_s23, 128  ;;  %s953_s30 = smov [#allocation2]  }
  0x48   : > { %p820_p12 = scmp.ne.s32.totalorder %s1118_s23, %s819_s28  ;;  %s824_s8 = sshll.u32 %s953_s30, 4  ;;  %s825_s8 = int_to_ptr.vmem [resolvable:$false] %s824_s8 }
  0x49   : > { %s826_s26 = scalar_lea.vmem %s825_s8, 256  ;;  %p827_p9 = scmp.lt.s32.totalorder %s1118_s23, %s825_s8 }
  0x4a   : > { %p822_p1 = pnand %p820_p12, %p1079_p4  ;;  %p828_p2 = scmp.lt.s32.totalorder %s826_s26, %s819_s28 }
  0x4c   : > { %p823_p8 = pneg %p822_p1  ;;  %p829_p6 = por %p828_p2, %p827_p9 }
  0x4e   : > { %p830_p13 = pnand %p829_p6, %p823_p8 }
  0x50   : > { %833 = shalt.err (!%p830_p13)
}
  0x51   : > { %704 = dma.hbm_to_vmem [thread:$0]  (!%p1057_p0), %s1115_s5, 128, %s1118_s23, %s163_s1  }
  0x52   : > { %s204_s16 = scalar_lea.vmem [#allocation7], %s1050_s29  ;;  %s834_s10 = scalar_lea.hbm %s1124_s7, 128 }
  0x53   : > { %s212_s20 = sshll.u32 %s204_s16, 4  ;;  %p835_p11 = scmp.ne.s32.totalorder %s1124_s7, %s834_s10  ;;  %s213_s20 = int_to_ptr.vmem [resolvable:$true] %s212_s20 }
  0x54   : > { %s839_s22 = scalar_lea.hbm %s1336_s2, 256  ;;  %p840_p5 = scmp.lt.u32.totalorder %s1124_s7, %s1336_s2 }
  0x55   : > { %p837_p2 = pnand %p835_p11, %p1079_p4  ;;  %p841_p7 = scmp.lt.u32.totalorder %s839_s22, %s834_s10 }
  0x56   : > { %p843_p12 = scmp.lt.u32.totalorder %s834_s10, %s1124_s7 }
  0x57   : > { %p838_p3 = pneg %p837_p2  ;;  %p842_p10 = por %p841_p7, %p840_p5 }
  0x59   : > { %p844_p1 = por %p843_p12, %p842_p10 }
  0x5b   : > { %p845_p8 = pnand %p844_p1, %p838_p3 }
  0x5d   : > { %848 = shalt.err (!%p845_p8)
}
  0x5e   : > { %s849_s1 = scalar_lea.vmem %s213_s20, 128  ;;  %s954_s29 = smov [#allocation7]  }
  0x5f   : > { %p850_p9 = scmp.ne.s32.totalorder %s213_s20, %s849_s1  ;;  %s854_s5 = sshll.u32 %s954_s29, 4  ;;  %s855_s5 = int_to_ptr.vmem [resolvable:$false] %s854_s5 }
  0x60   : > { %s856_s23 = scalar_lea.vmem %s855_s5, 256  ;;  %p857_p11 = scmp.lt.s32.totalorder %s213_s20, %s855_s5 }
  0x61   : > { %p852_p6 = pnand %p850_p9, %p1079_p4  ;;  %p858_p2 = scmp.lt.s32.totalorder %s856_s23, %s849_s1 }
  0x63   : > { %p853_p13 = pneg %p852_p6  ;;  %p859_p0 = por %p858_p2, %p857_p11 }
  0x65   : > { %p860_p5 = pnand %p859_p0, %p853_p13 }
  0x67   : > { %863 = shalt.err (!%p860_p5)
}
  0x68   : > { %p1357_p7 = scmp.ne.s32.totalorder %s1351_s4, 0  ;;  %p1358_p3 = scmp.ne.s32.totalorder %s1356_s19, 0 }
  0x69   : > { %s1171_s21 = sand.u32 (!%p1358_p3), 1, %s934_s13   ;;  %p1359_p0 = scmp.ne.s32.totalorder (!%p1358_p3), %s1347_s24, 0 }
  0x6a   : > { %710 = dma.hbm_to_vmem [thread:$0]  (!%p1357_p7), %s1124_s7, 128, %s213_s20, %s1073_s11  }
  0x6b   : > { %221 = sbr.rel (%p1358_p3) target bundleno = 230 (0xe6), region = 32  ;;  %s1174_s8 = sshll.u32 (!%p1358_p3), %s1171_s21, 3 }
  0x6c   : > { %s224_s26 = scalar_lea.sflag (!%p1358_p3), [#allocation3], %s1171_s21  ;;  %s227_s16 = scalar_lea.vmem (!%p1358_p3), [#allocation2], %s1174_s8 }
  0x72   : > { %917 = dma.done.wait (%p1359_p0), %s224_s26, 128  }
  0x73   : > { %919 = vsyncadd (%p1359_p0), %s224_s26, 4294967168  ;;  %s232_s4 = sand.u32 1, %s1010_s18   ;;  %s236_s19 = scalar_lea.vmem [#allocation5], %s1174_s8 }
  0x74   : > { %s233_s11 = scalar_lea.sflag [#allocation6], %s232_s4 }
  0x75   : > { %921 = dma.done.wait (%p1359_p0), %s233_s11, 256  }
  0x76   : > { %923 = vsyncadd (%p1359_p0), %s233_s11, 4294967040  ;;  %v289_v0 = vld [vmem:[%s227_s16] sm:$0xff]  ;;  %v290_v7 = vld [vmem:[%s236_s19] sm:$0xff]  ;;  %s245_s18 = scalar_lea.vmem [#allocation7], %s1174_s8  ;;  %v955_v23 = vmov 0.0   ;;  %vm485_vm10 = vcmask 1040384  }
  0x77   : > { %v293_v1 = vand.u32 2147483647, %v289_v0  ;;  %vm300_vm0 = vcmp.ge.f32.partialorder %v289_v0, 0.0  ;;  %v1189_v14 = vld [vmem:[%s245_s18] sm:$0xff]  ;;  %v305_v16 = vmax.f32 %v289_v0, 0.0  ;;  %v306_v17 = vmul.f32 %v290_v7, %v289_v0  ;;  %s690_s24 = smul.u32 24, %s1171_s21 }
  0x78   : > { %vm292_vm1 = vcmp.gt.f32.partialorder %v1189_v14, 0.0  ;;  %vm487_vm12 = vcmask 1041408   ;;  %vm489_vm13 = vcmask 1042432   ;;  %vm491_vm14 = vcmask 1043456   ;;  %s689_s20 = smul.u32 384, %s942_s15  ;;  %s521_s15 = scalar_lea.sflag [#allocation4], %s1171_s21 }
  0x79   : > { %v294_v2 = vsub.f32 0.0, %v293_v1  ;;  %v307_v20 = vsub.f32 %v305_v16, %v306_v17  ;;  %vm493_vm15 = vcmask 1044480   ;;  %s1257_s7 = scalar_lea.vmem [#allocation8], %s690_s24  ;;  %p1360_p10 = scmp.ne.s32.totalorder %s1348_s25, 0 }
  0x7a   : > { %s534_s10 = sshll.u32 %s1257_s7, 4  ;;  %s1282_s22 = scalar_lea.hbm %s1337_s3, %s689_s20  ;;  %s1284_s10 = int_to_ptr.vmem [resolvable:$true] %s534_s10 }
  0x7b   : > { %v295_v3 = vmul.f32 1.442695, %v294_v2  ;;  %s864_s28 = scalar_lea.vmem %s1284_s10, 384  ;;  %s956_s30 = smov [#allocation8]  }
  0x7c   : > { %p865_p4 = scmp.ne.s32.totalorder %s1284_s10, %s864_s28  ;;  %s868_s1 = sshll.u32 %s956_s30, 4  ;;  %s869_s1 = int_to_ptr.vmem [resolvable:$false] %s868_s1 }
  0x7d   : > { %768 = vpow2.f32 %v295_v3  ;;  %v685_v3 = vsel %vm292_vm1, 1.0, %v955_v23  ;;  %s870_s29 = scalar_lea.vmem %s869_s1, 768  ;;  %p871_p8 = scmp.lt.s32.totalorder %s1284_s10, %s869_s1 }
  0x7e   : > { %p866_p12 = pnand %p865_p4, %p1360_p10  ;;  %p872_p9 = scmp.lt.s32.totalorder %s870_s29, %s864_s28 }
  0x80   : > { %p867_p1 = pneg %p866_p12  ;;  %p873_p6 = por %p872_p9, %p871_p8 }
  0x82   : > { %p874_p13 = pnand %p873_p6, %p867_p1 }
  0x87   : > { %v769_v4 = vpop.eup %768 }
  0x88   : > { %v297_v5 = vadd.f32 1.0, %v769_v4 }
  0x8a   : > { %770 = vrcp.f32 %v297_v5 }
  0x8b   : > { %772 = vlog2.f32 %v297_v5 }
  0x94   : > { %v771_v6 = vpop.eup %770 }
  0x95   : > { %v301_v8 = vmul.f32 %v771_v6, %v769_v4  ;;  %v773_v22 = vpop.eup %772 }
  0x96   : > { %v309_v32 = vmul.f32 0.6931472, %v773_v22 }
  0x97   : > { %v302_v9 = vsel %vm300_vm0, %v771_v6, %v301_v8  ;;  %vm495_vm0 = vcmask 1045504  }
  0x98   : > { %v303_v10 = vsub.f32 %v302_v9, %v290_v7  ;;  %v1223_v44 = vadd.f32 %v309_v32, %v307_v20 }
  0x9a   : > { %v304_v11 = vand.u32 2147483647, %v303_v10 }
  0x9c   : > { %v311_v12 = vmul.f32 10.0, %v304_v11 }
  0x9e   : > { %v312_v13 = vfloor.f32 %v311_v12 }
  0xa0   : > { %v691_v15 = vtrunc.f32 %v312_v13 }
  0xa2   : > { %v692_v18 = vcvt.f32.s32 %v691_v15 }
  0xa4   : > { %vm314_vm2 = vcmp.lt.s32.totalorder %v692_v18, 9 }
  0xa5   : > { %v315_v19 = vsel %vm314_vm2, %v692_v18, 9  ;;  %vm497_vm2 = vcmask 1046528  }
  0xa6   : > { %v1194_v21 = vsel %vm292_vm1, %v315_v19, 10 }
  0xa7   : > { %vm317_vm3 = vcmp.eq.s32.totalorder %v1194_v21, 0  ;;  %vm333_vm4 = vcmp.eq.s32.totalorder %v1194_v21, 1  ;;  %vm349_vm5 = vcmp.eq.s32.totalorder %v1194_v21, 2  ;;  %vm365_vm6 = vcmp.eq.s32.totalorder %v1194_v21, 3 }
  0xa8   : > { %v675_v24 = vsel %vm317_vm3, 1.0, %v955_v23  ;;  %v676_v25 = vsel %vm333_vm4, 1.0, %v955_v23  ;;  %v1203_v26 = vsel %vm349_vm5, 1.0, %v955_v23  ;;  %v1206_v27 = vsel %vm365_vm6, 1.0, %v955_v23 }
  0xa9   : > { %v320_v28 = vrot.slane %v675_v24, 4  ;;  %v336_v29 = vrot.slane %v676_v25, 4  ;;  %v352_v30 = vrot.slane %v1203_v26, 4  ;;  %v368_v31 = vrot.slane %v1206_v27, 4 }
  0xaa   : > { %vm381_vm7 = vcmp.eq.s32.totalorder %v1194_v21, 4  ;;  %vm397_vm8 = vcmp.eq.s32.totalorder %v1194_v21, 5  ;;  %vm413_vm9 = vcmp.eq.s32.totalorder %v1194_v21, 6  ;;  %vm429_vm11 = vcmp.eq.s32.totalorder %v1194_v21, 7 }
  0xab   : > { %v321_v33 = vadd.f32 %v675_v24, %v320_v28  ;;  %v337_v34 = vadd.f32 %v676_v25, %v336_v29  ;;  %v353_v35 = vadd.f32 %v1203_v26, %v352_v30  ;;  %v369_v36 = vadd.f32 %v1206_v27, %v368_v31 }
  0xac   : > { %v1216_v37 = vsel %vm381_vm7, 1.0, %v955_v23  ;;  %v1219_v38 = vsel %vm397_vm8, 1.0, %v955_v23  ;;  %v681_v39 = vsel %vm413_vm9, 1.0, %v955_v23  ;;  %v682_v55 = vsel %vm429_vm11, 1.0, %v955_v23 }
  0xad   : > { %v322_v40 = vrot.slane %v321_v33, 2  ;;  %v338_v41 = vrot.slane %v337_v34, 2  ;;  %v354_v42 = vrot.slane %v353_v35, 2  ;;  %v370_v43 = vrot.slane %v369_v36, 2 }
  0xae   : > { %v384_v45 = vrot.slane %v1216_v37, 4  ;;  %v400_v46 = vrot.slane %v1219_v38, 4  ;;  %v416_v47 = vrot.slane %v681_v39, 4  ;;  %v432_v63 = vrot.slane %v682_v55, 4 }
  0xaf   : > { %v323_v48 = vadd.f32 %v322_v40, %v321_v33  ;;  %v339_v49 = vadd.f32 %v338_v41, %v337_v34  ;;  %v355_v50 = vadd.f32 %v354_v42, %v353_v35  ;;  %v371_v51 = vadd.f32 %v370_v43, %v369_v36 }
  0xb0   : > { %v385_v52 = vadd.f32 %v1216_v37, %v384_v45  ;;  %v401_v53 = vadd.f32 %v1219_v38, %v400_v46  ;;  %v417_v54 = vadd.f32 %v681_v39, %v416_v47  ;;  %v433_v7 = vadd.f32 %v682_v55, %v432_v63 }
  0xb1   : > { %v324_v56 = vrot.slane %v323_v48, 1  ;;  %v340_v57 = vrot.slane %v339_v49, 1  ;;  %v356_v58 = vrot.slane %v355_v50, 1  ;;  %v372_v59 = vrot.slane %v371_v51, 1 }
  0xb2   : > { %v386_v60 = vrot.slane %v385_v52, 2  ;;  %v402_v61 = vrot.slane %v401_v53, 2  ;;  %v418_v62 = vrot.slane %v417_v54, 2  ;;  %v326_v10 = vmul.f32 %v675_v24, %v1223_v44 }
  0xb3   : > { %v325_v0 = vadd.f32 %v324_v56, %v323_v48  ;;  %v341_v1 = vadd.f32 %v340_v57, %v339_v49  ;;  %v357_v2 = vadd.f32 %v356_v58, %v355_v50  ;;  %v373_v8 = vadd.f32 %v372_v59, %v371_v51 }
  0xb4   : > { %v387_v4 = vadd.f32 %v386_v60, %v385_v52  ;;  %v403_v5 = vadd.f32 %v402_v61, %v401_v53  ;;  %v419_v6 = vadd.f32 %v418_v62, %v417_v54  ;;  %v342_v11 = vmul.f32 %v676_v25, %v1223_v44 }
  0xb5   : > { %v486_v9 = vsel %vm485_vm10, %v325_v0, %v341_v1  ;;  %v434_v16 = vrot.slane %v433_v7, 2  ;;  %v327_v14 = vrot.slane %v326_v10, 4  ;;  %v422_v29 = vmul.f32 %v681_v39, %v1223_v44 }
  0xb6   : > { %v388_v12 = vrot.slane %v387_v4, 1  ;;  %v404_v13 = vrot.slane %v403_v5, 1  ;;  %v420_v15 = vrot.slane %v419_v6, 1  ;;  %v488_v17 = vsel %vm487_vm12, %v486_v9, %v357_v2 }
  0xb7   : > { %v343_v18 = vrot.slane %v342_v11, 4  ;;  %v435_v28 = vadd.f32 %v434_v16, %v433_v7  ;;  %v438_v24 = vmul.f32 %v682_v55, %v1223_v44  ;;  %v490_v25 = vsel %vm489_vm13, %v488_v17, %v373_v8 }
  0xb8   : > { %v389_v19 = vadd.f32 %v388_v12, %v387_v4  ;;  %v405_v20 = vadd.f32 %v404_v13, %v403_v5  ;;  %v421_v22 = vadd.f32 %v420_v15, %v419_v6  ;;  %v479_v30 = vrot.slane %v685_v3, 4 }
  0xb9   : > { %v436_v31 = vrot.slane %v435_v28, 1  ;;  %v358_v33 = vmul.f32 %v1203_v26, %v1223_v44  ;;  %v374_v34 = vmul.f32 %v1206_v27, %v1223_v44  ;;  %v328_v36 = vadd.f32 %v327_v14, %v326_v10 }
  0xba   : > { %v492_v32 = vsel %vm491_vm14, %v490_v25, %v389_v19  ;;  %v344_v40 = vadd.f32 %v343_v18, %v342_v11  ;;  %v390_v39 = vmul.f32 %v1216_v37, %v1223_v44  ;;  %v439_v46 = vrot.slane %v438_v24, 4 }
  0xbb   : > { %v494_v35 = vsel %vm493_vm15, %v492_v32, %v405_v20  ;;  %v437_v41 = vadd.f32 %v436_v31, %v435_v28  ;;  %v359_v43 = vrot.slane %v358_v33, 4  ;;  %v375_v45 = vrot.slane %v374_v34, 4 }
  0xbc   : > { %v496_v42 = vsel %vm495_vm0, %v494_v35, %v421_v22  ;;  %v391_v47 = vrot.slane %v390_v39, 4  ;;  %v406_v26 = vmul.f32 %v1219_v38, %v1223_v44  ;;  %vm445_vm1 = vcmp.eq.s32.totalorder %v1194_v21, 8 }
  0xbd   : > { %v498_v48 = vsel %vm497_vm2, %v496_v42, %v437_v41  ;;  %v360_v27 = vadd.f32 %v359_v43, %v358_v33  ;;  %v423_v49 = vrot.slane %v422_v29, 4  ;;  %v376_v50 = vadd.f32 %v375_v45, %v374_v34 }
  0xbe   : > { %v480_v51 = vadd.f32 %v685_v3, %v479_v30  ;;  %v329_v52 = vrot.slane %v328_v36, 2  ;;  %v345_v37 = vrot.slane %v344_v40, 2  ;;  %v407_v53 = vrot.slane %v406_v26, 4  ;;  %517 = vst [vmem:[%s1257_s7] sm:$0xff] %v498_v48 }
  0xbf   : > { %v683_v54 = vsel %vm445_vm1, 1.0, %v955_v23  ;;  %v440_v55 = vadd.f32 %v439_v46, %v438_v24  ;;  %v392_v56 = vadd.f32 %v391_v47, %v390_v39  ;;  %v361_v57 = vrot.slane %v360_v27, 2 }
  0xc0   : > { %v448_v38 = vrot.slane %v683_v54, 4  ;;  %v408_v58 = vadd.f32 %v407_v53, %v406_v26  ;;  %vm461_vm3 = vcmp.eq.s32.totalorder %v1194_v21, 9  ;;  %v377_v59 = vrot.slane %v376_v50, 2 }
  0xc1   : > { %v684_v61 = vsel %vm461_vm3, 1.0, %v955_v23  ;;  %v424_v62 = vadd.f32 %v423_v49, %v422_v29  ;;  %v330_v63 = vadd.f32 %v329_v52, %v328_v36  ;;  %v346_v0 = vadd.f32 %v345_v37, %v344_v40 }
  0xc2   : > { %v449_v60 = vadd.f32 %v683_v54, %v448_v38  ;;  %v464_v1 = vrot.slane %v684_v61, 4  ;;  %v481_v2 = vrot.slane %v480_v51, 2  ;;  %v393_v3 = vrot.slane %v392_v56, 2 }
  0xc3   : > { %v425_v5 = vrot.slane %v424_v62, 2  ;;  %v441_v6 = vrot.slane %v440_v55, 2  ;;  %v362_v7 = vadd.f32 %v361_v57, %v360_v27  ;;  %v409_v8 = vrot.slane %v408_v58, 2 }
  0xc4   : > { %v450_v4 = vrot.slane %v449_v60, 2  ;;  %v465_v9 = vadd.f32 %v684_v61, %v464_v1  ;;  %v378_v10 = vadd.f32 %v377_v59, %v376_v50  ;;  %v454_v15 = vmul.f32 %v683_v54, %v1223_v44 }
  0xc5   : > { %v426_v12 = vadd.f32 %v425_v5, %v424_v62  ;;  %v442_v21 = vadd.f32 %v441_v6, %v440_v55  ;;  %v470_v23 = vmul.f32 %v684_v61, %v1223_v44  ;;  %v482_v16 = vadd.f32 %v481_v2, %v480_v51 }
  0xc6   : > { %v451_v11 = vadd.f32 %v450_v4, %v449_v60  ;;  %v466_v13 = vrot.slane %v465_v9, 2  ;;  %v331_v17 = vrot.slane %v330_v63, 1  ;;  %v347_v14 = vrot.slane %v346_v0, 1 }
  0xc7   : > { %v394_v18 = vadd.f32 %v393_v3, %v392_v56  ;;  %v410_v20 = vadd.f32 %v409_v8, %v408_v58  ;;  %v455_v28 = vrot.slane %v454_v15, 4  ;;  %v471_v29 = vrot.slane %v470_v23, 4 }
  0xc8   : > { %v452_v19 = vrot.slane %v451_v11, 1  ;;  %v467_v22 = vadd.f32 %v466_v13, %v465_v9  ;;  %v363_v24 = vrot.slane %v362_v7, 1  ;;  %v379_v25 = vrot.slane %v378_v10, 1 }
  0xc9   : > { %v427_v30 = vrot.slane %v426_v12, 1  ;;  %v443_v31 = vrot.slane %v442_v21, 1  ;;  %v456_v34 = vadd.f32 %v455_v28, %v454_v15  ;;  %v472_v35 = vadd.f32 %v471_v29, %v470_v23 }
  0xca   : > { %v453_v32 = vadd.f32 %v452_v19, %v451_v11  ;;  %v468_v33 = vrot.slane %v467_v22, 1  ;;  %v332_v36 = vadd.f32 %v331_v17, %v330_v63  ;;  %v348_v40 = vadd.f32 %v347_v14, %v346_v0 }
  0xcb   : > { %v395_v44 = vrot.slane %v394_v18, 1  ;;  %v411_v39 = vrot.slane %v410_v20, 1  ;;  %v457_v42 = vrot.slane %v456_v34, 2  ;;  %v473_v43 = vrot.slane %v472_v35, 2 }
  0xcc   : > { %v469_v41 = vadd.f32 %v468_v33, %v467_v22  ;;  %v364_v45 = vadd.f32 %v363_v24, %v362_v7  ;;  %v428_v46 = vadd.f32 %v427_v30, %v426_v12  ;;  %v444_v47 = vadd.f32 %v443_v31, %v442_v21 }
  0xcd   : > { %v483_v26 = vrot.slane %v482_v16, 1  ;;  %v380_v48 = vadd.f32 %v379_v25, %v378_v10  ;;  %v458_v49 = vadd.f32 %v457_v42, %v456_v34  ;;  %v474_v50 = vadd.f32 %v473_v43, %v472_v35 }
  0xce   : > { %v499_v27 = vsel %vm485_vm10, %v453_v32, %v469_v41  ;;  %v396_v51 = vadd.f32 %v395_v44, %v394_v18  ;;  %v412_v37 = vadd.f32 %v411_v39, %v410_v20  ;;  %v506_v38 = vsel %vm485_vm10, %v428_v46, %v444_v47 }
  0xcf   : > { %v500_v52 = vsel %vm487_vm12, %v499_v27, %v332_v36  ;;  %v459_v54 = vrot.slane %v458_v49, 1  ;;  %v475_v55 = vrot.slane %v474_v50, 1  ;;  %v484_v60 = vadd.f32 %v483_v26, %v482_v16 }
  0xd0   : > { %v501_v53 = vsel %vm489_vm13, %v500_v52, %v348_v40 }
  0xd1   : > { %v502_v56 = vsel %vm491_vm14, %v501_v53, %v364_v45  ;;  %v460_v58 = vadd.f32 %v459_v54, %v458_v49  ;;  %v476_v59 = vadd.f32 %v475_v55, %v474_v50 }
  0xd2   : > { %v503_v57 = vsel %vm493_vm15, %v502_v56, %v380_v48 }
  0xd3   : > { %v504_v61 = vsel %vm495_vm0, %v503_v57, %v396_v51  ;;  %v507_v63 = vsel %vm487_vm12, %v506_v38, %v460_v58 }
  0xd4   : > { %v505_v62 = vsel %vm497_vm2, %v504_v61, %v412_v37  ;;  %v508_v0 = vsel %vm489_vm13, %v507_v63, %v476_v59 }
  0xd5   : > { %v509_v1 = vsel %vm491_vm14, %v508_v0, %v484_v60  ;;  %518 = vst [vmem:[%s1257_s7 + $0x8] sm:$0xff] %v505_v62 }
  0xd6   : > { %v510_v2 = vsel %vm493_vm15, %v509_v1, 0.0 }
  0xd7   : > { %519 = vst [vmem:[%s1257_s7 + $0x10] sm:$0xff] %v510_v2 }
  0xd8   : > { %877 = shalt.err (!%p874_p13)
}
  0xd9   : > { %s878_s5 = scalar_lea.hbm %s1282_s22, 384  ;;  %s882_s26 = scalar_lea.hbm %s1337_s3, 768 }
  0xda   : > { %p879_p11 = scmp.ne.s32.totalorder %s1282_s22, %s878_s5  ;;  %p883_p7 = scmp.lt.u32.totalorder %s1282_s22, %s1337_s3 }
  0xdb   : > { %p884_p3 = scmp.lt.u32.totalorder %s882_s26, %s878_s5  ;;  %p886_p4 = scmp.lt.u32.totalorder %s878_s5, %s1282_s22 }
  0xdc   : > { %p880_p2 = pnand %p879_p11, %p1360_p10 }
  0xdd   : > { %p885_p0 = por %p884_p3, %p883_p7 }
  0xde   : > { %p881_p5 = pneg %p880_p2 }
  0xdf   : > { %p887_p12 = por %p886_p4, %p885_p0 }
  0xe1   : > { %p888_p1 = pnand %p887_p12, %p881_p5 }
  0xe3   : > { %891 = shalt.err (!%p888_p1)
}
  0xe4   : > { %s957_s11 = smov 128   ;;  %s958_s19 = smov 8  }
  0xe5   : > { %699 = dma.vmem_to_hbm [thread:$0]  (%p1360_p10), %s1284_s10, 384, %s1282_s22, %s521_s15, %s957_s11, %s957_s11, %s958_s19  }
  0xe6 PF: > { %s549_s18 = sand.u32 1, %s930_s12   ;;  %p1361_p8 = scmp.ne.s32.totalorder %s1350_s27, 0 }
  0xe7   : > { %p1362_p9 = scmp.ge.s32.totalorder %s950_s17, 2  ;;  %s550_s24 = scalar_lea.sflag [#allocation4], %s549_s18 }
  0xe9   : > { %p712_p6 = pnand %p1362_p9, %p1361_p8 }
  0xeb   : > { %925 = dma.done.wait (!%p712_p6), %s550_s24, 384  }
  0xec   : > { %927 = vsyncadd (!%p712_p6), %s550_s24, 4294966912  ;;  %s22_s17 = sadd.s32 1, %s950_s17   ;;  %s1363_s7 = sld [smem:[#allocation14_spill]] }
  0xed   : > { %p19_p13 = scmp.ge.s32.totalorder %s22_s17, 4   ;;  %s1364_s15 = sld [smem:[#allocation12_spill]] }
  0xee   : > { %s1365_s16 = sld [smem:[#allocation13_spill]]  ;;  %s1366_s12 = smov %s934_s13 }
  0xef   : > { %s1367_s13 = smov %s938_s14  ;;  %21 = sbr.rel (!%p19_p13) target bundleno = 10 (0xa), region = 105 }
  0xf2   : > { %s1368_s14 = smov %s1363_s7 }
  0xf6   :  { %555 = vsyncpa [#allocation3], 1 }
  0xf7   :  { %557 = vsyncpa [#allocation3 + $0x1], 1 }
  0xf8   :  { %558 = vsyncpa [#allocation6], 1 }
  0xf9   :  { %560 = vsyncpa [#allocation6 + $0x1], 1 }
  0xfa   :  { %561 = vsyncpa [#allocation4], 1 }
  0xfb   :  { %563 = vsyncpa [#allocation4 + $0x1], 1 }

</bundles_post_ra>
